<compile_context>
chip_gen: v7x
topology: tpu7x:2x2x1
jax: 0.10.0
libtpu: 0.0.40
codegen_flags: <defaults>
</compile_context>

<pallas_src>
import jax
import jax.numpy as jnp
from jax.experimental import pallas as pl
from jax.experimental.pallas import tpu as pltpu

IN_DIM = 28 * 28
H1, H2, H3, OUT_DIM = 90, 70, 50, 10


def mlp_kernel(x_ref,
               w1_ref, b1_ref,
               w2_ref, b2_ref,
               w3_ref, b3_ref,
               w4_ref, b4_ref,
               o_ref):
    """Fused 4-layer MLP forward on one (TB, 784) batch tile."""
    x = x_ref[...]                                                   # (TB, 784) f32

    h = jnp.dot(x, w1_ref[...], preferred_element_type=jnp.float32) + b1_ref[...]
    h = jnp.maximum(h, 0.0)                                          # (TB, 90)

    h = jnp.dot(h, w2_ref[...], preferred_element_type=jnp.float32) + b2_ref[...]
    h = jnp.maximum(h, 0.0)                                          # (TB, 70)

    h = jnp.dot(h, w3_ref[...], preferred_element_type=jnp.float32) + b3_ref[...]
    h = jnp.maximum(h, 0.0)                                          # (TB, 50)

    out = jnp.dot(h, w4_ref[...], preferred_element_type=jnp.float32) + b4_ref[...]
    o_ref[...] = out.astype(o_ref.dtype)                             # (TB, 10)


def custom_mlp_forward(img, params, *, tb=512):
    """img: (B, 1, 28, 28) float32 NCHW.  params: dict of (w, b) per layer."""
    B = img.shape[0]
    x = img.reshape(B, -1).astype(jnp.float32)                       # (B, 784), same as torch .view

    # Batch tile: multiple of 8 sublanes, capped at `tb` (512 default:
    # ~1.6 MiB x-tile, ~3.2 MiB double-buffered + ~0.4 MiB weights -> far
    # under VMEM on every generation including v7x).
    TB = min(tb, max(8, ((B + 7) // 8) * 8))
    n_tiles = pl.cdiv(B, TB)
    B_pad = n_tiles * TB
    if B_pad != B:
        x = jnp.pad(x, ((0, B_pad - B), (0, 0)))                     # padded rows are discarded later

    (w1, b1), (w2, b2), (w3, b3), (w4, b4) = (
        params["fc1"], params["fc2"], params["fc3"], params["fc4"])
    b1r, b2r, b3r, b4r = (b1.reshape(1, -1), b2.reshape(1, -1),
                          b3.reshape(1, -1), b4.reshape(1, -1))

    def batch_map(i):
        return (i, 0)

    def const_map(i):
        return (0, 0)

    # Explicit specs (no late-binding lambda-over-loop-var):
    in_specs = [
        pl.BlockSpec((TB, IN_DIM), batch_map),           # x: streamed per tile
        pl.BlockSpec(w1.shape, const_map), pl.BlockSpec(b1r.shape, const_map),
        pl.BlockSpec(w2.shape, const_map), pl.BlockSpec(b2r.shape, const_map),
        pl.BlockSpec(w3.shape, const_map), pl.BlockSpec(b3r.shape, const_map),
        pl.BlockSpec(w4.shape, const_map), pl.BlockSpec(b4r.shape, const_map),
    ]
    out_spec = pl.BlockSpec((TB, OUT_DIM), batch_map)

    param_bytes = sum(int(a.size) * a.dtype.itemsize
                      for a in (w1, b1, w2, b2, w3, b3, w4, b4))
    flops = 2 * B_pad * (IN_DIM * H1 + H1 * H2 + H2 * H3 + H3 * OUT_DIM)
    cost = pl.CostEstimate(
        flops=flops,
        transcendentals=0,
        bytes_accessed=B_pad * IN_DIM * 4 + B_pad * OUT_DIM * 4 + param_bytes,
    )

    out = pl.pallas_call(
        mlp_kernel,
        out_shape=jax.ShapeDtypeStruct((B_pad, OUT_DIM), jnp.float32),
        grid=(n_tiles,),
        in_specs=in_specs,
        out_specs=out_spec,
        compiler_params=pltpu.CompilerParams(
            dimension_semantics=("parallel",),          # shard batch tiles across v7x's 2 TCs
            vmem_limit_bytes=32 * 1024 * 1024,
        ),
        cost_estimate=cost,
    )(x, w1, b1r, w2, b2r, w3, b3r, w4, b4r)

    return out[:B]


def init_params(key):
    """Deterministic init matching torch.nn.Linear shapes (stored transposed)."""
    dims = [(IN_DIM, H1), (H1, H2), (H2, H3), (H3, OUT_DIM)]
    names = ["fc1", "fc2", "fc3", "fc4"]
    params = {}
    for name, (fan_in, fan_out) in zip(names, dims):
        key, kw, kb = jax.random.split(key, 3)
        bound = 1.0 / jnp.sqrt(fan_in)
        # PyTorch keeps weight as (out, in); we store (in, out) == W.T so the
        # kernel computes x @ W.T + b exactly like nn.Linear.
        w = jax.random.uniform(kw, (fan_in, fan_out), jnp.float32, -bound, bound)
        b = jax.random.uniform(kb, (fan_out,), jnp.float32, -bound, bound)
        params[name] = (w, b)
    return params


def reference_forward(img, params):
    """Plain-JAX reference mirroring the PyTorch forward."""
    x = img.reshape(img.shape[0], -1)
    for name in ["fc1", "fc2", "fc3"]:
        w, b = params[name]
        x = jnp.maximum(x @ w + b, 0.0)
    w, b = params["fc4"]
    return x @ w + b


if __name__ == "__main__":
    key = jax.random.PRNGKey(0)
    key, k_img1, k_img2 = jax.random.split(key, 3)
    params = init_params(key)

    # Case 1: tiny batch (B=2) — single padded tile.
    B1 = 2
    img1 = jax.random.normal(k_img1, (B1, 1, 28, 28), dtype=jnp.float32)  # NCHW
    out1 = jax.block_until_ready(custom_mlp_forward(img1, params))
    ref1 = reference_forward(img1, params)
    assert out1.shape == (B1, 10)
    assert jnp.allclose(out1, ref1, atol=1e-4, rtol=1e-4), "mismatch vs reference (B=2)"

    # Case 2: ragged batch with a multi-step grid (exercises the batch tiling path).
    B2 = 37
    img2 = jax.random.normal(k_img2, (B2, 1, 28, 28), dtype=jnp.float32)
    out2 = jax.block_until_ready(custom_mlp_forward(img2, params, tb=16))
    ref2 = reference_forward(img2, params)
    assert out2.shape == (B2, 10)
    assert jnp.allclose(out2, ref2, atol=1e-4, rtol=1e-4), "mismatch vs reference (B=37)"

    print("KERNEL_OK")
</pallas_src>

<mosaic_0001>
module attributes {stable_mosaic.version = 11 : i64} {
  func.func @mlp_kernel(%arg0: i32, %arg1: memref<8x784xf32, #tpu.memory_space<vmem>>, %arg2: memref<784x90xf32, #tpu.memory_space<vmem>>, %arg3: memref<1x90xf32, #tpu.memory_space<vmem>>, %arg4: memref<90x70xf32, #tpu.memory_space<vmem>>, %arg5: memref<1x70xf32, #tpu.memory_space<vmem>>, %arg6: memref<70x50xf32, #tpu.memory_space<vmem>>, %arg7: memref<1x50xf32, #tpu.memory_space<vmem>>, %arg8: memref<50x10xf32, #tpu.memory_space<vmem>>, %arg9: memref<1x10xf32, #tpu.memory_space<vmem>>, %arg10: memref<8x10xf32, #tpu.memory_space<vmem>>) attributes {dimension_semantics = [#tpu.dimension_semantics<parallel>], iteration_bounds = array<i64: 1>, scalar_prefetch = 0 : i64, scratch_operands = 0 : i64, tpu.core_type = #tpu.core_type<tc>, window_params = [{transform_indices = @transform_0, window_bounds = array<i64: 8, 784>}, {pipeline_mode = #tpu.pipeline_mode<synchronous>, transform_indices = @transform_1, window_bounds = array<i64: 784, 90>}, {pipeline_mode = #tpu.pipeline_mode<synchronous>, transform_indices = @transform_2, window_bounds = array<i64: 1, 90>}, {pipeline_mode = #tpu.pipeline_mode<synchronous>, transform_indices = @transform_3, window_bounds = array<i64: 90, 70>}, {pipeline_mode = #tpu.pipeline_mode<synchronous>, transform_indices = @transform_4, window_bounds = array<i64: 1, 70>}, {pipeline_mode = #tpu.pipeline_mode<synchronous>, transform_indices = @transform_5, window_bounds = array<i64: 70, 50>}, {pipeline_mode = #tpu.pipeline_mode<synchronous>, transform_indices = @transform_6, window_bounds = array<i64: 1, 50>}, {pipeline_mode = #tpu.pipeline_mode<synchronous>, transform_indices = @transform_7, window_bounds = array<i64: 50, 10>}, {pipeline_mode = #tpu.pipeline_mode<synchronous>, transform_indices = @transform_8, window_bounds = array<i64: 1, 10>}, {transform_indices = @transform_9, window_bounds = array<i64: 8, 10>}]} {
    %c0 = arith.constant 0 : index
    %c0_0 = arith.constant 0 : index
    %0 = vector.load %arg1[%c0, %c0_0] : memref<8x784xf32, #tpu.memory_space<vmem>>, vector<8x784xf32>
    %c0_1 = arith.constant 0 : index
    %c0_2 = arith.constant 0 : index
    %1 = vector.load %arg2[%c0_1, %c0_2] : memref<784x90xf32, #tpu.memory_space<vmem>>, vector<784x90xf32>
    %cst = arith.constant dense<0.000000e+00> : vector<8x90xf32>
    %2 = tpu.matmul %0, %1, %cst {dimension_numbers = #tpu.dot_dimension_numbers<[1], [0], [0], [1], [0, 0, 1, 1], [], []>} : vector<8x784xf32>, vector<784x90xf32>, vector<8x90xf32> -> vector<8x90xf32>
    %c0_3 = arith.constant 0 : index
    %c0_4 = arith.constant 0 : index
    %3 = vector.load %arg3[%c0_3, %c0_4] : memref<1x90xf32, #tpu.memory_space<vmem>>, vector<1x90xf32>
    %4 = vector.broadcast %3 : vector<1x90xf32> to vector<8x90xf32>
    %5 = arith.addf %2, %4 : vector<8x90xf32>
    %cst_5 = arith.constant 0.000000e+00 : f32
    %6 = vector.broadcast %cst_5 : f32 to vector<8x90xf32>
    %7 = arith.maximumf %5, %6 : vector<8x90xf32>
    %c0_6 = arith.constant 0 : index
    %c0_7 = arith.constant 0 : index
    %8 = vector.load %arg4[%c0_6, %c0_7] : memref<90x70xf32, #tpu.memory_space<vmem>>, vector<90x70xf32>
    %cst_8 = arith.constant dense<0.000000e+00> : vector<8x70xf32>
    %9 = tpu.matmul %7, %8, %cst_8 {dimension_numbers = #tpu.dot_dimension_numbers<[1], [0], [0], [1], [0, 0, 1, 1], [], []>} : vector<8x90xf32>, vector<90x70xf32>, vector<8x70xf32> -> vector<8x70xf32>
    %c0_9 = arith.constant 0 : index
    %c0_10 = arith.constant 0 : index
    %10 = vector.load %arg5[%c0_9, %c0_10] : memref<1x70xf32, #tpu.memory_space<vmem>>, vector<1x70xf32>
    %11 = vector.broadcast %10 : vector<1x70xf32> to vector<8x70xf32>
    %12 = arith.addf %9, %11 : vector<8x70xf32>
    %cst_11 = arith.constant 0.000000e+00 : f32
    %13 = vector.broadcast %cst_11 : f32 to vector<8x70xf32>
    %14 = arith.maximumf %12, %13 : vector<8x70xf32>
    %c0_12 = arith.constant 0 : index
    %c0_13 = arith.constant 0 : index
    %15 = vector.load %arg6[%c0_12, %c0_13] : memref<70x50xf32, #tpu.memory_space<vmem>>, vector<70x50xf32>
    %cst_14 = arith.constant dense<0.000000e+00> : vector<8x50xf32>
    %16 = tpu.matmul %14, %15, %cst_14 {dimension_numbers = #tpu.dot_dimension_numbers<[1], [0], [0], [1], [0, 0, 1, 1], [], []>} : vector<8x70xf32>, vector<70x50xf32>, vector<8x50xf32> -> vector<8x50xf32>
    %c0_15 = arith.constant 0 : index
    %c0_16 = arith.constant 0 : index
    %17 = vector.load %arg7[%c0_15, %c0_16] : memref<1x50xf32, #tpu.memory_space<vmem>>, vector<1x50xf32>
    %18 = vector.broadcast %17 : vector<1x50xf32> to vector<8x50xf32>
    %19 = arith.addf %16, %18 : vector<8x50xf32>
    %cst_17 = arith.constant 0.000000e+00 : f32
    %20 = vector.broadcast %cst_17 : f32 to vector<8x50xf32>
    %21 = arith.maximumf %19, %20 : vector<8x50xf32>
    %c0_18 = arith.constant 0 : index
    %c0_19 = arith.constant 0 : index
    %22 = vector.load %arg8[%c0_18, %c0_19] : memref<50x10xf32, #tpu.memory_space<vmem>>, vector<50x10xf32>
    %cst_20 = arith.constant dense<0.000000e+00> : vector<8x10xf32>
    %23 = tpu.matmul %21, %22, %cst_20 {dimension_numbers = #tpu.dot_dimension_numbers<[1], [0], [0], [1], [0, 0, 1, 1], [], []>} : vector<8x50xf32>, vector<50x10xf32>, vector<8x10xf32> -> vector<8x10xf32>
    %c0_21 = arith.constant 0 : index
    %c0_22 = arith.constant 0 : index
    %24 = vector.load %arg9[%c0_21, %c0_22] : memref<1x10xf32, #tpu.memory_space<vmem>>, vector<1x10xf32>
    %25 = vector.broadcast %24 : vector<1x10xf32> to vector<8x10xf32>
    %26 = arith.addf %23, %25 : vector<8x10xf32>
    %c0_23 = arith.constant 0 : index
    %c0_24 = arith.constant 0 : index
    %27 = vector.load %arg10[%c0_23, %c0_24] : memref<8x10xf32, #tpu.memory_space<vmem>>, vector<8x10xf32>
    tpu.vector_store %arg10[%c0_23, %c0_24], %26 {strides = array<i32>} : memref<8x10xf32, #tpu.memory_space<vmem>>, vector<8x10xf32>,
    return
  }
  func.func @transform_0(%arg0: i32) -> (i32, i32) {
    %c0_i32 = arith.constant 0 : i32
    %c0_i32_0 = arith.constant 0 : i32
    return %arg0, %c0_i32 : i32, i32
  }
  func.func @transform_1(%arg0: i32) -> (i32, i32) {
    %c0_i32 = arith.constant 0 : i32
    %c0_i32_0 = arith.constant 0 : i32
    %c0_i32_1 = arith.constant 0 : i32
    return %c0_i32, %c0_i32_0 : i32, i32
  }
  func.func @transform_2(%arg0: i32) -> (i32, i32) {
    %c0_i32 = arith.constant 0 : i32
    %c0_i32_0 = arith.constant 0 : i32
    %c0_i32_1 = arith.constant 0 : i32
    return %c0_i32, %c0_i32_0 : i32, i32
  }
  func.func @transform_3(%arg0: i32) -> (i32, i32) {
    %c0_i32 = arith.constant 0 : i32
    %c0_i32_0 = arith.constant 0 : i32
    %c0_i32_1 = arith.constant 0 : i32
    return %c0_i32, %c0_i32_0 : i32, i32
  }
  func.func @transform_4(%arg0: i32) -> (i32, i32) {
    %c0_i32 = arith.constant 0 : i32
    %c0_i32_0 = arith.constant 0 : i32
    %c0_i32_1 = arith.constant 0 : i32
    return %c0_i32, %c0_i32_0 : i32, i32
  }
  func.func @transform_5(%arg0: i32) -> (i32, i32) {
    %c0_i32 = arith.constant 0 : i32
    %c0_i32_0 = arith.constant 0 : i32
    %c0_i32_1 = arith.constant 0 : i32
    return %c0_i32, %c0_i32_0 : i32, i32
  }
  func.func @transform_6(%arg0: i32) -> (i32, i32) {
    %c0_i32 = arith.constant 0 : i32
    %c0_i32_0 = arith.constant 0 : i32
    %c0_i32_1 = arith.constant 0 : i32
    return %c0_i32, %c0_i32_0 : i32, i32
  }
  func.func @transform_7(%arg0: i32) -> (i32, i32) {
    %c0_i32 = arith.constant 0 : i32
    %c0_i32_0 = arith.constant 0 : i32
    %c0_i32_1 = arith.constant 0 : i32
    return %c0_i32, %c0_i32_0 : i32, i32
  }
  func.func @transform_8(%arg0: i32) -> (i32, i32) {
    %c0_i32 = arith.constant 0 : i32
    %c0_i32_0 = arith.constant 0 : i32
    %c0_i32_1 = arith.constant 0 : i32
    return %c0_i32, %c0_i32_0 : i32, i32
  }
  func.func @transform_9(%arg0: i32) -> (i32, i32) {
    %c0_i32 = arith.constant 0 : i32
    %c0_i32_0 = arith.constant 0 : i32
    return %arg0, %c0_i32 : i32, i32
  }
}

</mosaic_0001>

<bundles_post_ra>
// kernel: tpu_custom_call.1
= control target key start
LH: loop header
LB: loop body
LE: loop exit
PB: predicated region body
PF: predicated region fallthrough
CT: control target
= control target key end

     0   :  { %s1624_s0 = inlined_call_operand.vmem [shape: f32[8,784], index: 0, kind: input, shape index: {}]   ;;  %s1625_s1 = inlined_call_operand.vmem [shape: f32[784,90], index: 1, kind: input, shape index: {}]   ;;  %s1626_s2 = inlined_call_operand.vmem [shape: f32[1,90], index: 2, kind: input, shape index: {}]   ;;  %s1627_s3 = inlined_call_operand.vmem [shape: f32[90,70], index: 3, kind: input, shape index: {}]   ;;  %s1628_s4 = inlined_call_operand.vmem [shape: f32[1,70], index: 4, kind: input, shape index: {}]   ;;  %s1629_s5 = inlined_call_operand.vmem [shape: f32[70,50], index: 5, kind: input, shape index: {}]   ;;  %s1630_s6 = inlined_call_operand.vmem [shape: f32[1,50], index: 6, kind: input, shape index: {}]   ;;  %s1631_s7 = inlined_call_operand.vmem [shape: f32[50,10], index: 7, kind: input, shape index: {}]   ;;  %s1632_s8 = inlined_call_operand.vmem [shape: f32[1,10], index: 8, kind: input, shape index: {}]   ;;  %s1633_s9 = inlined_call_operand.hbm [shape: f32[8,10], index: 9, kind: output, shape index: {}]  }
   0x1   :  { %v56_v0 = vld [vmem:[%s1625_s1 + $0x80] sm:$0xff]  ;;  %v57_v1 = vld [vmem:[%s1625_s1 + $0x88] sm:$0xff]  ;;  %v58_v11 = vld [vmem:[%s1625_s1 + $0x90] sm:$0xff] }
   0x2   :  { %v40_v2 = vld [vmem:[%s1625_s1] sm:$0xff]  ;;  %v952_v3 = vpack.c.bf16 %v57_v1, %v56_v0  ;;  %v41_v4 = vld [vmem:[%s1625_s1 + $0x8] sm:$0xff]  ;;  %v59_v13 = vld [vmem:[%s1625_s1 + $0x98] sm:$0xff] }
   0x3   :  { %v88_v5 = vld [vmem:[%s1625_s1 + $0x180] sm:$0xff]  ;;  %v89_v6 = vld [vmem:[%s1625_s1 + $0x188] sm:$0xff]  ;;  %v954_v7 = vpack.c.bf16 %v41_v4, %v40_v2  ;;  %v42_v14 = vld [vmem:[%s1625_s1 + $0x10] sm:$0xff]  ;;  %v956_v16 = vpack.c.bf16 %v59_v13, %v58_v11 }
   0x4   :  { %v984_v8 = vpack.c.bf16 %v89_v6, %v88_v5  ;;  %v72_v9 = vld [vmem:[%s1625_s1 + $0x100] sm:$0xff]  ;;  %v73_v10 = vld [vmem:[%s1625_s1 + $0x108] sm:$0xff]  ;;  %953 = vmatprep.subr.bf16.mxu0 %v952_v3  ;;  %v43_v15 = vld [vmem:[%s1625_s1 + $0x18] sm:$0xff] }
   0x5   :  { %v986_v12 = vpack.c.bf16 %v73_v10, %v72_v9  ;;  %955 = vmatpush3.bf16.msra.mxu0 %v954_v7  ;;  %v958_v17 = vpack.c.bf16 %v43_v15, %v42_v14  ;;  %v90_v18 = vld [vmem:[%s1625_s1 + $0x190] sm:$0xff]  ;;  %v91_v19 = vld [vmem:[%s1625_s1 + $0x198] sm:$0xff]  ;;  %v60_v23 = vld [vmem:[%s1625_s1 + $0xa0] sm:$0xff] }
   0x6   :  { %985 = vmatprep.subr.bf16.mxu1 %v984_v8  ;;  %v74_v20 = vld [vmem:[%s1625_s1 + $0x110] sm:$0xff]  ;;  %v988_v21 = vpack.c.bf16 %v91_v19, %v90_v18  ;;  %v75_v22 = vld [vmem:[%s1625_s1 + $0x118] sm:$0xff]  ;;  %v61_v24 = vld [vmem:[%s1625_s1 + $0xa8] sm:$0xff]  ;;  %957 = vmatprep.subr.bf16.mxu0 %v956_v16 }
   0x7   :  { %987 = vmatpush3.bf16.msra.mxu1 %v986_v12  ;;  %v990_v25 = vpack.c.bf16 %v75_v22, %v74_v20  ;;  %v960_v26 = vpack.c.bf16 %v61_v24, %v60_v23  ;;  %v44_v27 = vld [vmem:[%s1625_s1 + $0x20] sm:$0xff]  ;;  %v45_v28 = vld [vmem:[%s1625_s1 + $0x28] sm:$0xff]  ;;  %v62_v35 = vld [vmem:[%s1625_s1 + $0xb0] sm:$0xff] }
   0x8   :  { %v92_v29 = vld [vmem:[%s1625_s1 + $0x1a0] sm:$0xff]  ;;  %989 = vmatprep.subr.bf16.mxu1 %v988_v21  ;;  %v93_v30 = vld [vmem:[%s1625_s1 + $0x1a8] sm:$0xff]  ;;  %v962_v33 = vpack.c.bf16 %v45_v28, %v44_v27  ;;  %v63_v36 = vld [vmem:[%s1625_s1 + $0xb8] sm:$0xff] }
   0x9   :  { %v76_v31 = vld [vmem:[%s1625_s1 + $0x120] sm:$0xff]  ;;  %v77_v32 = vld [vmem:[%s1625_s1 + $0x128] sm:$0xff]  ;;  %959 = vmatpush3.bf16.msra.mxu0 %v958_v17  ;;  %v992_v34 = vpack.c.bf16 %v93_v30, %v92_v29  ;;  %v46_v37 = vld [vmem:[%s1625_s1 + $0x30] sm:$0xff]  ;;  %v964_v39 = vpack.c.bf16 %v63_v36, %v62_v35 }
   0xa   :  { %961 = vmatprep.subr.bf16.mxu0 %v960_v26  ;;  %v994_v38 = vpack.c.bf16 %v77_v32, %v76_v31  ;;  %v47_v40 = vld [vmem:[%s1625_s1 + $0x38] sm:$0xff]  ;;  %v94_v41 = vld [vmem:[%s1625_s1 + $0x1b0] sm:$0xff]  ;;  %v64_v46 = vld [vmem:[%s1625_s1 + $0xc0] sm:$0xff] }
   0xb   :  { %991 = vmatpush3.bf16.msra.mxu1 %v990_v25  ;;  %v95_v42 = vld [vmem:[%s1625_s1 + $0x1b8] sm:$0xff]  ;;  %v78_v44 = vld [vmem:[%s1625_s1 + $0x130] sm:$0xff]  ;;  %v65_v47 = vld [vmem:[%s1625_s1 + $0xc8] sm:$0xff]  ;;  %v966_v48 = vpack.c.bf16 %v47_v40, %v46_v37 }
   0xc   :  { %993 = vmatprep.subr.bf16.mxu1 %v992_v34  ;;  %v996_v43 = vpack.c.bf16 %v95_v42, %v94_v41  ;;  %v79_v45 = vld [vmem:[%s1625_s1 + $0x138] sm:$0xff]  ;;  %v96_v49 = vld [vmem:[%s1625_s1 + $0x1c0] sm:$0xff]  ;;  %v97_v50 = vld [vmem:[%s1625_s1 + $0x1c8] sm:$0xff]  ;;  %v968_v52 = vpack.c.bf16 %v65_v47, %v64_v46 }
   0xd   :  { %963 = vmatpush3.bf16.msra.mxu0 %v962_v33  ;;  %v998_v51 = vpack.c.bf16 %v79_v45, %v78_v44  ;;  %v48_v53 = vld [vmem:[%s1625_s1 + $0x40] sm:$0xff]  ;;  %v49_v54 = vld [vmem:[%s1625_s1 + $0x48] sm:$0xff]  ;;  %v1000_v56 = vpack.c.bf16 %v97_v50, %v96_v49  ;;  %v66_v58 = vld [vmem:[%s1625_s1 + $0xd0] sm:$0xff]  ;;  %v1120_v50 = vmov 0.0|0.0  }
   0xe   :  { %965 = vmatprep.subr.bf16.mxu0 %v964_v39  ;;  %v80_v55 = vld [vmem:[%s1625_s1 + $0x140] sm:$0xff]  ;;  %v81_v57 = vld [vmem:[%s1625_s1 + $0x148] sm:$0xff]  ;;  %v67_v59 = vld [vmem:[%s1625_s1 + $0xd8] sm:$0xff]  ;;  %v970_v62 = vpack.c.bf16 %v49_v54, %v48_v53 }
   0xf   :  { %995 = vmatpush3.bf16.msra.mxu1 %v994_v38  ;;  %v98_v60 = vld [vmem:[%s1625_s1 + $0x1d0] sm:$0xff]  ;;  %v99_v61 = vld [vmem:[%s1625_s1 + $0x1d8] sm:$0xff]  ;;  %v1002_v63 = vpack.c.bf16 %v81_v57, %v80_v55  ;;  %v972_v0 = vpack.c.bf16 %v67_v59, %v66_v58  ;;  %v68_v6 = vld [vmem:[%s1625_s1 + $0xe0] sm:$0xff] }
  0x10   :  { %997 = vmatprep.subr.bf16.mxu1 %v996_v43  ;;  %v50_v1 = vld [vmem:[%s1625_s1 + $0x50] sm:$0xff]  ;;  %v51_v2 = vld [vmem:[%s1625_s1 + $0x58] sm:$0xff]  ;;  %v1004_v4 = vpack.c.bf16 %v99_v61, %v98_v60  ;;  %v69_v7 = vld [vmem:[%s1625_s1 + $0xe8] sm:$0xff] }
  0x11   :  { %967 = vmatpush3.bf16.msra.mxu0 %v966_v48  ;;  %v82_v3 = vld [vmem:[%s1625_s1 + $0x150] sm:$0xff]  ;;  %v83_v5 = vld [vmem:[%s1625_s1 + $0x158] sm:$0xff]  ;;  %v100_v8 = vld [vmem:[%s1625_s1 + $0x1e0] sm:$0xff]  ;;  %v974_v10 = vpack.c.bf16 %v51_v2, %v50_v1  ;;  %v976_v14 = vpack.c.bf16 %v69_v7, %v68_v6 }
  0x12   :  { %969 = vmatprep.subr.bf16.mxu0 %v968_v52  ;;  %v101_v9 = vld [vmem:[%s1625_s1 + $0x1e8] sm:$0xff]  ;;  %v52_v11 = vld [vmem:[%s1625_s1 + $0x60] sm:$0xff]  ;;  %v1006_v13 = vpack.c.bf16 %v83_v5, %v82_v3  ;;  %v70_v19 = vld [vmem:[%s1625_s1 + $0xf0] sm:$0xff] }
  0x13   :  { %999 = vmatpush3.bf16.msra.mxu1 %v998_v51  ;;  %v34_v12 = vld [vmem:[%s1624_s0 + $0x8] sm:$0xff]  ;;  %v84_v16 = vld [vmem:[%s1625_s1 + $0x160] sm:$0xff]  ;;  %v1008_v18 = vpack.c.bf16 %v101_v9, %v100_v8  ;;  %v71_v20 = vld [vmem:[%s1625_s1 + $0xf8] sm:$0xff] }
  0x14   :  { %1001 = vmatprep.subr.bf16.mxu1 %v1000_v56  ;;  %v53_v15 = vld [vmem:[%s1625_s1 + $0x68] sm:$0xff]  ;;  %213 = vmatprep.mubr.f32.mxu0 %v34_v12  ;;  %v36_v21 = vld [vmem:[%s1624_s0 + $0x18] sm:$0xff]  ;;  %v102_v22 = vld [vmem:[%s1625_s1 + $0x1f0] sm:$0xff]  ;;  %v980_v26 = vpack.c.bf16 %v71_v20, %v70_v19 }
  0x15   :  { %971 = vmatpush3.bf16.msra.mxu0 %v970_v62  ;;  %v85_v17 = vld [vmem:[%s1625_s1 + $0x168] sm:$0xff]  ;;  %v103_v23 = vld [vmem:[%s1625_s1 + $0x1f8] sm:$0xff]  ;;  %283 = vmatprep.mubr.f32.mxu1 %v36_v21  ;;  %v978_v24 = vpack.c.bf16 %v53_v15, %v52_v11  ;;  %v54_v27 = vld [vmem:[%s1625_s1 + $0x70] sm:$0xff] }
  0x16   :  { %973 = vmatprep.subr.bf16.mxu0 %v972_v0  ;;  %v1010_v25 = vpack.c.bf16 %v85_v17, %v84_v16  ;;  %v55_v28 = vld [vmem:[%s1625_s1 + $0x78] sm:$0xff]  ;;  %v86_v29 = vld [vmem:[%s1625_s1 + $0x170] sm:$0xff]  ;;  %v1012_v30 = vpack.c.bf16 %v103_v23, %v102_v22  ;;  %v120_v32 = vld [vmem:[%s1625_s1 + $0x280] sm:$0xff] }
  0x17   :  { %1003 = vmatpush3.bf16.msra.mxu1 %v1002_v63  ;;  %v87_v31 = vld [vmem:[%s1625_s1 + $0x178] sm:$0xff]  ;;  %v121_v33 = vld [vmem:[%s1625_s1 + $0x288] sm:$0xff]  ;;  %v982_v34 = vpack.c.bf16 %v55_v28, %v54_v27  ;;  %v104_v37 = vld [vmem:[%s1625_s1 + $0x200] sm:$0xff] }
  0x18   :  { %1005 = vmatprep.subr.bf16.mxu1 %v1004_v4  ;;  %v1014_v35 = vpack.c.bf16 %v87_v31, %v86_v29  ;;  %v1016_v36 = vpack.c.bf16 %v121_v33, %v120_v32  ;;  %v105_v38 = vld [vmem:[%s1625_s1 + $0x208] sm:$0xff]  ;;  %v122_v39 = vld [vmem:[%s1625_s1 + $0x290] sm:$0xff]  ;;  %v123_v40 = vld [vmem:[%s1625_s1 + $0x298] sm:$0xff] }
  0x19   :  { %975 = vmatpush3.bf16.msra.mxu0 %v974_v10  ;;  %v33_v41 = vld [vmem:[%s1624_s0] sm:$0xff]  ;;  %v1018_v42 = vpack.c.bf16 %v105_v38, %v104_v37  ;;  %v35_v43 = vld [vmem:[%s1624_s0 + $0x10] sm:$0xff]  ;;  %v1020_v45 = vpack.c.bf16 %v123_v40, %v122_v39  ;;  %v107_v46 = vld [vmem:[%s1625_s1 + $0x218] sm:$0xff] }
  0x1a   :  { %977 = vmatprep.subr.bf16.mxu0 %v976_v14  ;;  %v106_v44 = vld [vmem:[%s1625_s1 + $0x210] sm:$0xff]  ;;  %v124_v47 = vld [vmem:[%s1625_s1 + $0x2a0] sm:$0xff]  ;;  %v125_v48 = vld [vmem:[%s1625_s1 + $0x2a8] sm:$0xff] }
  0x1b   :  { %1007 = vmatpush3.bf16.msra.mxu1 %v1006_v13  ;;  %v38_v49 = vld [vmem:[%s1624_s0 + $0x28] sm:$0xff]  ;;  %v136_v51 = vld [vmem:[%s1625_s1 + $0x300] sm:$0xff] }
  0x1c   :  { %1009 = vmatprep.subr.bf16.mxu1 %v1008_v18  ;;  %v137_v52 = vld [vmem:[%s1625_s1 + $0x308] sm:$0xff] }
  0x1d   :  { %979 = vmatpush3.bf16.msra.mxu0 %v978_v24  ;;  %v1049_v53 = vpack.c.bf16 %v137_v52, %v136_v51 }
  0x1e   :  { %981 = vmatprep.subr.bf16.mxu0 %v980_v26 }
  0x1f   :  { %1011 = vmatpush3.bf16.msra.mxu1 %v1010_v25 }
  0x20   :  { %1013 = vmatprep.subr.bf16.mxu1 %v1012_v30 }
  0x21   :  { %983 = vmatpush3.bf16.msra.mxu0 %v982_v34 }
  0x22   :  { %1017 = vmatprep.subr.bf16.mxu0 %v1016_v36 }
  0x23   :  { %1015 = vmatpush3.bf16.msra.mxu1 %v1014_v35 }
  0x24   :  { %1048 = vmatprep.subr.bf16.mxu1 %v1120_v50  ;;  %214 = vmatmul.mubr.f32.vlgmr.msra.gmra.mrb[0].mxu0 %v33_v41 }
  0x25   :  { %14 = vsyncpa [#allocation3], 0  ;;  %1019 = vmatpush3.bf16.msra.mxu0 %v1018_v42  ;;  %v1022_v54 = vpack.c.bf16 %v107_v46, %v106_v44  ;;  %v1024_v55 = vpack.c.bf16 %v125_v48, %v124_v47  ;;  %v108_v56 = vld [vmem:[%s1625_s1 + $0x220] sm:$0xff]  ;;  %v109_v57 = vld [vmem:[%s1625_s1 + $0x228] sm:$0xff]  ;;  %353 = vmatprep.mubr.f32.mxu0 %v38_v49  ;;  %vm1121_vm0 = vmmov 0   ;;  %v1122_v60 = vmov 0.0  }
  0x26   :  { %284 = vmatmul.mubr.f32.vlgmr.msra.gmra.mrb[0].mxu1 %v35_v43  ;;  %1021 = vmatprep.subr.bf16.mxu0 %v1020_v45  ;;  %v126_v58 = vld [vmem:[%s1625_s1 + $0x2b0] sm:$0xff]  ;;  %v127_v59 = vld [vmem:[%s1625_s1 + $0x2b8] sm:$0xff]  ;;  %vm145_vm1 = vcmask 130048   ;;  %v1026_v62 = vpack.c.bf16 %v109_v57, %v108_v56  ;;  %v128_v2 = vld [vmem:[%s1625_s1 + $0x2c0] sm:$0xff]  ;;  %vm453_vm2 = vcmask 1041408   ;;  %vm1123_vm3 = vmmov 1  }
  0x27   :  { %1050 = vmatpush3.bf16.msra.mxu1 %v1049_v53  ;;  %884 = vmatprep.mubr.msk.f32.mxu1 %vm1121_vm0, %v1122_v60  ;;  %v39_v61 = vld [vmem:[%s1624_s0 + $0x30] sm:$0xff]  ;;  %v1028_v63 = vpack.c.bf16 %v127_v59, %v126_v58  ;;  %v111_v1 = vld [vmem:[%s1625_s1 + $0x238] sm:$0xff]  ;;  %v129_v3 = vld [vmem:[%s1625_s1 + $0x2c8] sm:$0xff]  ;;  %vm449_vm5 = vcmask 736256   ;;  %vm548_vm6 = vcmask 1045504   ;;  %vm544_vm7 = vcmask 572416  }
  0x28   :  { %1051 = vmatprep.subr.bf16.mxu1 %v1120_v50  ;;  %v110_v0 = vld [vmem:[%s1625_s1 + $0x230] sm:$0xff]  ;;  %v1032_v5 = vpack.c.bf16 %v129_v3, %v128_v2  ;;  %v112_v6 = vld [vmem:[%s1625_s1 + $0x240] sm:$0xff]  ;;  %v113_v7 = vld [vmem:[%s1625_s1 + $0x248] sm:$0xff]  ;;  %vm637_vm8 = vcmask 408576   ;;  %s1124_s19 = smov [#allocation2]   ;;  %vm714_vm9 = vcmask 80896  }
  0x29   :  { %1023 = vmatpush3.bf16.msra.mxu0 %v1022_v54  ;;  %v1030_v4 = vpack.c.bf16 %v111_v1, %v110_v0  ;;  %v130_v8 = vld [vmem:[%s1625_s1 + $0x2d0] sm:$0xff]  ;;  %v131_v9 = vld [vmem:[%s1625_s1 + $0x2d8] sm:$0xff]  ;;  %v1034_v10 = vpack.c.bf16 %v113_v7, %v112_v6  ;;  %v132_v14 = vld [vmem:[%s1625_s1 + $0x2e0] sm:$0xff]  ;;  %s722_s20 = sshll.u32 %s1124_s19, 4  ;;  %s723_s20 = int_to_ptr.vmem [resolvable:$true] %s722_s20 }
  0x2a   :  { %1025 = vmatprep.subr.bf16.mxu0 %v1024_v55  ;;  %885 = vmatmul.mubr.msk.f32.vlgmr.msra.gmra.mrb[2].mxu1 %vm145_vm1, %v39_v61  ;;  %v1036_v11 = vpack.c.bf16 %v131_v9, %v130_v8  ;;  %v114_v12 = vld [vmem:[%s1625_s1 + $0x250] sm:$0xff]  ;;  %v115_v13 = vld [vmem:[%s1625_s1 + $0x258] sm:$0xff]  ;;  %v133_v15 = vld [vmem:[%s1625_s1 + $0x2e8] sm:$0xff]  ;;  %p1101_p1 = scmp.lt.s32.totalorder %s723_s20, %s723_s20 }
  0x2b   :  { %911 = vmatprep.mubr.msk.f32.mxu1 %vm1121_vm0, %v1122_v60  ;;  %v1038_v16 = vpack.c.bf16 %v115_v13, %v114_v12  ;;  %v1040_v17 = vpack.c.bf16 %v133_v15, %v132_v14  ;;  %v116_v18 = vld [vmem:[%s1625_s1 + $0x260] sm:$0xff]  ;;  %v117_v19 = vld [vmem:[%s1625_s1 + $0x268] sm:$0xff]  ;;  %v134_v20 = vld [vmem:[%s1625_s1 + $0x2f0] sm:$0xff] }
  0x2c   :  { %v135_v21 = vld [vmem:[%s1625_s1 + $0x2f8] sm:$0xff]  ;;  %v1042_v22 = vpack.c.bf16 %v117_v19, %v116_v18  ;;  %v118_v24 = vld [vmem:[%s1625_s1 + $0x270] sm:$0xff]  ;;  %v37_v27 = vld [vmem:[%s1624_s0 + $0x20] sm:$0xff] }
  0x2d   :  { %1027 = vmatpush3.bf16.msra.mxu0 %v1026_v62  ;;  %v1044_v23 = vpack.c.bf16 %v135_v21, %v134_v20  ;;  %v119_v25 = vld [vmem:[%s1625_s1 + $0x278] sm:$0xff]  ;;  %v430_v28 = vld [vmem:[%s1627_s3] sm:$0xff]  ;;  %v431_v29 = vld [vmem:[%s1627_s3 + $0x8] sm:$0xff] }
  0x2e   :  { %1029 = vmatprep.subr.bf16.mxu0 %v1028_v63  ;;  %v1046_v26 = vpack.c.bf16 %v119_v25, %v118_v24  ;;  %v432_v30 = vld [vmem:[%s1627_s3 + $0x10] sm:$0xff]  ;;  %v1052_v31 = vpack.c.bf16 %v431_v29, %v430_v28  ;;  %v433_v32 = vld [vmem:[%s1627_s3 + $0x18] sm:$0xff]  ;;  %v434_v34 = vld [vmem:[%s1627_s3 + $0x20] sm:$0xff] }
  0x2f   :  { %v1055_v33 = vpack.c.bf16 %v433_v32, %v432_v30  ;;  %v435_v35 = vld [vmem:[%s1627_s3 + $0x28] sm:$0xff]  ;;  %v436_v37 = vld [vmem:[%s1627_s3 + $0x30] sm:$0xff]  ;;  %v437_v38 = vld [vmem:[%s1627_s3 + $0x38] sm:$0xff] }
  0x30   :  { %1053 = vmatpush3.bf16.msra.mxu1 %v1052_v31  ;;  %v1058_v36 = vpack.c.bf16 %v435_v35, %v434_v34  ;;  %v1061_v39 = vpack.c.bf16 %v437_v38, %v436_v37  ;;  %v438_v40 = vld [vmem:[%s1627_s3 + $0x40] sm:$0xff]  ;;  %v439_v41 = vld [vmem:[%s1627_s3 + $0x48] sm:$0xff]  ;;  %v440_v43 = vld [vmem:[%s1627_s3 + $0x50] sm:$0xff] }
  0x31   :  { %1031 = vmatpush3.bf16.msra.mxu0 %v1030_v4  ;;  %1054 = vmatprep.subr.bf16.mxu1 %v1120_v50  ;;  %v1064_v42 = vpack.c.bf16 %v439_v41, %v438_v40  ;;  %v441_v44 = vld [vmem:[%s1627_s3 + $0x58] sm:$0x3]  ;;  %vm1068_vm4 = vmpackc.low %vm453_vm2, %vm1123_vm3  ;;  %v730_v47 = vld [vmem:[%s1626_s2] ss:$0 sm:$0xff] }
  0x32   :  { %1033 = vmatprep.subr.bf16.mxu0 %v1032_v5  ;;  %v1067_v45 = vpack.c.bf16 %v441_v44, %v440_v43  ;;  %v528_v63 = vld [vmem:[%s1629_s5] sm:$0xff]  ;;  %v529_v0 = vld [vmem:[%s1629_s5 + $0x8] sm:$0xff]  ;;  %v530_v4 = vld [vmem:[%s1629_s5 + $0x10] sm:$0xff] }
  0x33   :  { %v1071_v2 = vpack.c.bf16 %v529_v0, %v528_v63  ;;  %v531_v5 = vld [vmem:[%s1629_s5 + $0x18] sm:$0xff]  ;;  %v532_v7 = vld [vmem:[%s1629_s5 + $0x20] sm:$0xff]  ;;  %v533_v8 = vld [vmem:[%s1629_s5 + $0x28] sm:$0xff] }
  0x34   :  { %1056 = vmatpush3.bf16.msra.mxu1 %v1055_v33  ;;  %v1074_v6 = vpack.c.bf16 %v531_v5, %v530_v4  ;;  %v1077_v9 = vpack.c.bf16 %v533_v8, %v532_v7  ;;  %v536_v13 = vld [vmem:[%s1629_s5 + $0x40] sm:$0x3f]  ;;  %v624_v15 = vld [vmem:[%s1631_s7 + $0x8] sm:$0xff]  ;;  %v626_v18 = vld [vmem:[%s1631_s7 + $0x18] sm:$0xff] }
  0x35   :  { %1035 = vmatpush3.bf16.msra.mxu0 %v1034_v10  ;;  %1057 = vmatprep.subr.bf16.mxu1 %v1120_v50  ;;  %v534_v10 = vld [vmem:[%s1629_s5 + $0x30] sm:$0xff]  ;;  %v623_v14 = vld [vmem:[%s1631_s7] sm:$0xff] }
  0x36   :  { %1037 = vmatprep.subr.bf16.mxu0 %v1036_v11  ;;  %v535_v11 = vld [vmem:[%s1629_s5 + $0x38] sm:$0xff]  ;;  %v732_v20 = vld [vmem:[%s1628_s4] ss:$0 sm:$0xff] }
  0x37   :  { %v1080_v12 = vpack.c.bf16 %v535_v11, %v534_v10  ;;  %v627_v25 = vld [vmem:[%s1631_s7 + $0x20] sm:$0xff] }
  0x38   :  { %1059 = vmatpush3.bf16.msra.mxu1 %v1058_v36  ;;  %v735_v28 = vld [vmem:[%s1630_s6] ss:$0 sm:$0xff] }
  0x39   :  { %1039 = vmatpush3.bf16.msra.mxu0 %v1038_v16  ;;  %1060 = vmatprep.subr.bf16.mxu1 %v1120_v50  ;;  %v625_v16 = vld [vmem:[%s1631_s7 + $0x10] sm:$0xff] }
  0x3a   :  { %1041 = vmatprep.subr.bf16.mxu0 %v1040_v17  ;;  %v1083_v17 = vpack.c.bf16 %v624_v15, %v623_v14  ;;  %v1086_v19 = vpack.c.bf16 %v626_v18, %v625_v16 }
  0x3c   :  { %1062 = vmatpush3.bf16.msra.mxu1 %v1061_v39 }
  0x3d   :  { %1043 = vmatpush3.bf16.msra.mxu0 %v1042_v22  ;;  %1063 = vmatprep.subr.bf16.mxu1 %v1120_v50 }
  0x3e   :  { %1045 = vmatprep.subr.bf16.mxu0 %v1044_v23 }
  0x40   :  { %1065 = vmatpush3.bf16.msra.mxu1 %v1064_v42 }
  0x41   :  { %1047 = vmatpush3.bf16.msra.mxu0 %v1046_v26  ;;  %1066 = vmatprep.subr.bf16.mxu1 %v1120_v50  ;;  %v628_v26 = vld [vmem:[%s1631_s7 + $0x28] sm:$0xff] }
  0x42   :  { %1082 = vmatprep.subr.bf16.mxu0 %v1120_v50 }
  0x44   :  { %354 = vmatmul.mubr.f32.vlgmr.msra.gmra.mrb[2].mxu0 %v37_v27  ;;  %1069 = vmatpush3.bf16.msk.msra.mxu1 %vm1068_vm4, %v1067_v45  ;;  %v1089_v27 = vpack.c.bf16 %v628_v26, %v627_v25 }
  0x45   :  { %949 = vmatprep.mubr.msk.f32.mxu0 %vm1121_vm0, %v1122_v60  ;;  %1070 = vmatprep.subr.bf16.mxu1 %v1120_v50 }
  0x46   :  { %1084 = vmatpush3.bf16.msra.mxu0 %v1083_v17 }
  0x47   :  { %1085 = vmatprep.subr.bf16.mxu0 %v1120_v50 }
  0x4a   :  { %1087 = vmatpush3.bf16.msra.mxu0 %v1086_v19 }
  0x4b   :  { %1088 = vmatprep.subr.bf16.mxu0 %v1120_v50 }
  0x4e   :  { %1090 = vmatpush3.bf16.msra.mxu0 %v1089_v27 }
  0x4f   :  { %947 = vmatprep.subr.mxu0 %v1122_v60 }
  0xf7   :  { %v773_v46 = vpop.f32.mrb[0].mxu0 }
  0xf8   :  { %v774_v48 = vpop.f32.mrb[1].mxu0 }
  0xf9   :  { %v808_v49 = vpop.f32.mrb[0].mxu1  ;;  %v775_v51 = vadd.f32 %v774_v48, %v773_v46 }
  0xfa   :  { %v809_v52 = vpop.f32.mrb[1].mxu1 }
  0xfb   :  { %v810_v53 = vadd.f32 %v809_v52, %v808_v49  ;;  %v216_v54 = vadd.f32 %v775_v51, %v730_v47 }
  0xfd   :  { %v286_v55 = vadd.f32 %v810_v53, %v216_v54  ;;  %v425_v56 = vpop.f32.mrb[2].mxu1 }
  0xfe   :  { %v886_v57 = vpop.f32.mrb[3].mxu1 }
 0x117   :  { %v843_v58 = vpop.f32.mrb[2].mxu0 }
 0x118   :  { %v844_v59 = vpop.f32.mrb[3].mxu0 }
 0x119   :  { %v845_v61 = vadd.f32 %v844_v59, %v843_v58 }
 0x11b   :  { %v356_v62 = vadd.f32 %v845_v61, %v286_v55 }
 0x11d   :  { %v426_v1 = vadd.f32 %v425_v56, %v356_v62 }
 0x11f   :  { %v429_v3 = vmax.f32 %v426_v1, 0.0 }
 0x121   :  { %912 = vmatmul.mubr.msk.f32.vlgmr.msra.gmra.mrb[4].mxu1 %vm449_vm5, %v429_v3 }
 0x122   :  { %1072 = vmatpush3.bf16.msra.mxu1 %v1071_v2  ;;  %932 = vmatprep.mubr.msk.f32.mxu1 %vm1121_vm0, %v1122_v60 }
 0x123   :  { %1073 = vmatprep.subr.bf16.mxu1 %v1120_v50 }
 0x126   :  { %1075 = vmatpush3.bf16.msra.mxu1 %v1074_v6 }
 0x127   :  { %1076 = vmatprep.subr.bf16.mxu1 %v1120_v50 }
 0x12a   :  { %1078 = vmatpush3.bf16.msra.mxu1 %v1077_v9 }
 0x12b   :  { %1079 = vmatprep.subr.bf16.mxu1 %v1120_v50  ;;  %v629_v50 = vld [vmem:[%s1631_s7 + $0x30] sm:$0x3]  ;;  %s1096_s7 = scalar_lea.vmem %s723_s20, 128 }
 0x12c   :  { %948 = vmatpush3.msk.msra.mxu0 %vm453_vm2, %v629_v50  ;;  %p1097_p0 = scmp.ne.s32.totalorder %s723_s20, %s1096_s7  ;;  %p1102_p2 = scmp.lt.s32.totalorder %s1096_s7, %s1096_s7 }
 0x12e   :  { %1081 = vmatpush3.bf16.msra.mxu1 %v1080_v12  ;;  %p1103_p3 = por %p1102_p2, %p1101_p1 }
 0x12f   :  { %930 = vmatprep.subr.mxu1 %v1122_v60  ;;  %v738_v60 = vld [vmem:[%s1632_s8] ss:$0 sm:$0xff] }
 0x130   :  { %p1104_p4 = pnand %p1103_p3, %p1097_p0 }
 0x132   :  { %931 = vmatpush3.msk.msra.mxu1 %vm548_vm6, %v536_v13 }
 0x1f4   :  { %v523_v21 = vpop.f32.mrb[4].mxu1 }
 0x1f5   :  { %v524_v22 = vadd.f32 %v732_v20, %v523_v21  ;;  %v913_v23 = vpop.f32.mrb[5].mxu1 }
 0x1f7   :  { %v527_v24 = vmax.f32 %v524_v22, 0.0 }
 0x1f9   :  { %933 = vmatmul.mubr.msk.f32.vlgmr.msra.gmra.mrb[6].mxu1 %vm544_vm7, %v527_v24 }
 0x2cc   :  { %v618_v29 = vpop.f32.mrb[6].mxu1 }
 0x2cd   :  { %v619_v30 = vadd.f32 %v735_v28, %v618_v29  ;;  %v934_v31 = vpop.f32.mrb[7].mxu1 }
 0x2cf   :  { %v622_v32 = vmax.f32 %v619_v30, 0.0 }
 0x2d1   :  { %950 = vmatmul.mubr.msk.f32.vlgmr.msra.gmra.mrb[4].mxu0 %vm637_vm8, %v622_v32 }
 0x3a4   :  { %v710_v33 = vpop.f32.mrb[4].mxu0 }
 0x3a5   :  { %v711_v34 = vadd.f32 %v738_v60, %v710_v33  ;;  %v951_v35 = vpop.f32.mrb[5].mxu0 }
 0x3a7   :  { %715 = vst.msk [vmem:[#allocation2] sm:$0xff] %vm714_vm9, %v711_v34 }
 0x3a8   :  { %1107 = shalt.err (!%p1104_p4)
}
 0x3a9   :  { %s1108_s22 = scalar_lea.hbm %s1633_s9, 128 }
 0x3aa   :  { %p1109_p5 = scmp.ne.s32.totalorder %s1633_s9, %s1108_s22  ;;  %p1112_p6 = scmp.lt.u32.totalorder %s1108_s22, %s1633_s9 }
 0x3ac   :  { %p1114_p7 = pnand %p1112_p6, %p1109_p5 }
 0x3ae   :  { %1117 = shalt.err (!%p1114_p7)
}
 0x3af   :  { %725 = dma.vmem_to_hbm [thread:$0]  %s723_s20, 128, %s1633_s9, [#allocation3]  }
 0x3b0   :  { %1118 = dma.done.wait [#allocation3], 128  }
 0x3b1   :  { %1119 = vsyncadd [#allocation3], 4294967168 }
 0x3b2   :  { %729 = vsyncpa [#allocation3], 1 }

</bundles_post_ra>
